<compile_context>
chip_gen: v7x
topology: tpu7x:2x2x1
jax: 0.10.0
libtpu: 0.0.40
codegen_flags: <defaults>
</compile_context>

<pallas_src>
import functools

import jax
import jax.numpy as jnp
from jax.experimental import pallas as pl
from jax.experimental.pallas import tpu as pltpu


def _round_up(x, m):
    return ((x + m - 1) // m) * m


# --------------------------------------------------------------------------
# Kernels
# --------------------------------------------------------------------------
def conv_stats_kernel(x_ref, w_ref, out_ref, psum_ref, psq_ref, acc_ref):
    """Tiled conv-as-matmul + per-tile partial BN statistics (sum, sum^2)."""
    k = pl.program_id(1)

    @pl.when(k == 0)
    def _():
        acc_ref[...] = jnp.zeros_like(acc_ref)

    acc_ref[...] += jnp.dot(x_ref[...], w_ref[...],
                            preferred_element_type=jnp.float32)

    @pl.when(k == pl.num_programs(1) - 1)
    def _():
        acc = acc_ref[...]
        out_ref[...] = acc
        tm, c = acc.shape
        a3 = acc.reshape(tm // 8, 8, c)          # sublane-aligned fold
        psum_ref[...] = jnp.sum(a3, axis=0)      # (8, Cpad) partial sum
        psq_ref[...] = jnp.sum(a3 * a3, axis=0)  # (8, Cpad) partial sum of sq


def conv_bias_kernel(x_ref, w_ref, b_ref, out_ref, acc_ref):
    """Tiled conv-as-matmul + bias (no-BatchNorm branch)."""
    k = pl.program_id(1)

    @pl.when(k == 0)
    def _():
        acc_ref[...] = jnp.zeros_like(acc_ref)

    acc_ref[...] += jnp.dot(x_ref[...], w_ref[...],
                            preferred_element_type=jnp.float32)

    @pl.when(k == pl.num_programs(1) - 1)
    def _():
        out_ref[...] = acc_ref[...] + b_ref[...]


def bn_act_kernel(y_ref, scale_ref, shift_ref, out_ref, *, neg_slope):
    """Fused BatchNorm affine (precomputed scale/shift) + LeakyReLU."""
    y = y_ref[...] * scale_ref[...] + shift_ref[...]
    out_ref[...] = jnp.where(y > 0, y, neg_slope * y)


# --------------------------------------------------------------------------
# Wrapper
# --------------------------------------------------------------------------
def basic_cnn_block(x_nchw, w_oihw, gamma, beta, bias, *, stride=1, padding=1,
                    use_bn=True, block_m=512, block_k=None,
                    compute_dtype=jnp.bfloat16, eps=1e-5, neg_slope=0.1,
                    vmem_limit_bytes=32 * 1024 * 1024):
    """NCHW in/out. Conv -> (BatchNorm training stats -> LeakyReLU) | (+bias).

    block_m: rows of the flattened output per tile (halve on v7x's 64MiB VMEM).
    block_k: optional K-tile (multiple of 128); None = single K block.
    """
    N, Cin, Hin, Win = x_nchw.shape
    Cout, Cin_w, KH, KW = w_oihw.shape
    assert Cin_w == Cin
    Hout = (Hin + 2 * padding - KH) // stride + 1
    Wout = (Win + 2 * padding - KW) // stride + 1
    M = N * Hout * Wout
    K = KH * KW * Cin

    # ---- im2col with taps folded into the contraction dim (glue, in XLA) ----
    x = jnp.transpose(x_nchw, (0, 2, 3, 1)).astype(jnp.float32)   # NHWC
    x = jnp.pad(x, ((0, 0), (padding, padding), (padding, padding), (0, 0)))
    taps = []
    for i in range(KH):
        for j in range(KW):
            taps.append(x[:, i:i + stride * (Hout - 1) + 1:stride,
                          j:j + stride * (Wout - 1) + 1:stride, :])
    patches = jnp.stack(taps, axis=3).reshape(M, K)                # (M, K)
    w = jnp.transpose(w_oihw.astype(jnp.float32),
                      (2, 3, 1, 0)).reshape(K, Cout)               # (K, Cout)

    # ---- padding / tiling choices ----
    C_pad = _round_up(Cout, 128)                       # lane-dense output
    TM = max(16, min(block_m, _round_up(M, 16)))
    TM = _round_up(TM, 16)
    M_pad = _round_up(M, TM)
    if block_k is None or block_k >= K:
        K_pad = _round_up(K, 16)
        TK = K_pad                                     # single K block
    else:
        TK = _round_up(block_k, 128)
        K_pad = _round_up(K, TK)
    num_m = M_pad // TM
    num_k = K_pad // TK

    patches_p = jnp.zeros((M_pad, K_pad), compute_dtype).at[:M, :K].set(
        patches.astype(compute_dtype))
    w_p = jnp.zeros((K_pad, C_pad), compute_dtype).at[:K, :Cout].set(
        w.astype(compute_dtype))

    x_spec = pl.BlockSpec((TM, TK), lambda i, k: (i, k))
    w_spec = pl.BlockSpec((TK, C_pad), lambda i, k: (k, 0))
    out_spec = pl.BlockSpec((TM, C_pad), lambda i, k: (i, 0))
    vec_spec = pl.BlockSpec((1, C_pad), lambda i, k: (0, 0))
    cparams = pltpu.CompilerParams(
        dimension_semantics=("parallel", "arbitrary"),
        vmem_limit_bytes=vmem_limit_bytes)

    if use_bn:
        stat_spec = pl.BlockSpec((8, C_pad), lambda i, k: (i, 0))
        conv_out, psum, psq = pl.pallas_call(
            conv_stats_kernel,
            out_shape=(jax.ShapeDtypeStruct((M_pad, C_pad), jnp.float32),
                       jax.ShapeDtypeStruct((num_m * 8, C_pad), jnp.float32),
                       jax.ShapeDtypeStruct((num_m * 8, C_pad), jnp.float32)),
            grid_spec=pltpu.PrefetchScalarGridSpec(
                num_scalar_prefetch=0,
                grid=(num_m, num_k),
                in_specs=[x_spec, w_spec],
                out_specs=(out_spec, stat_spec, stat_spec),
                scratch_shapes=[pltpu.VMEM((TM, C_pad), jnp.float32)]),
            compiler_params=cparams,
        )(patches_p, w_p)

        # Tiny cross-tile reduction + BN coefficients (in plain JAX).
        inv_m = 1.0 / float(M)                      # padded rows contribute 0
        mean = jnp.sum(psum, axis=0) * inv_m
        var = jnp.maximum(jnp.sum(psq, axis=0) * inv_m - mean * mean, 0.0)
        gamma_p = jnp.zeros((C_pad,), jnp.float32).at[:Cout].set(
            gamma.astype(jnp.float32))
        beta_p = jnp.zeros((C_pad,), jnp.float32).at[:Cout].set(
            beta.astype(jnp.float32))
        scale = gamma_p * jax.lax.rsqrt(var + eps)
        shift = beta_p - mean * scale

        out_flat = pl.pallas_call(
            functools.partial(bn_act_kernel, neg_slope=neg_slope),
            out_shape=jax.ShapeDtypeStruct((M_pad, C_pad), jnp.float32),
            grid_spec=pltpu.PrefetchScalarGridSpec(
                num_scalar_prefetch=0,
                grid=(num_m,),
                in_specs=[pl.BlockSpec((TM, C_pad), lambda i: (i, 0)),
                          pl.BlockSpec((1, C_pad), lambda i: (0, 0)),
                          pl.BlockSpec((1, C_pad), lambda i: (0, 0))],
                out_specs=pl.BlockSpec((TM, C_pad), lambda i: (i, 0))),
            compiler_params=pltpu.CompilerParams(
                dimension_semantics=("parallel",),
                vmem_limit_bytes=vmem_limit_bytes),
        )(conv_out, scale.reshape(1, C_pad), shift.reshape(1, C_pad))
    else:
        bias_p = jnp.zeros((1, C_pad), jnp.float32).at[0, :Cout].set(
            bias.astype(jnp.float32))
        out_flat = pl.pallas_call(
            conv_bias_kernel,
            out_shape=jax.ShapeDtypeStruct((M_pad, C_pad), jnp.float32),
            grid_spec=pltpu.PrefetchScalarGridSpec(
                num_scalar_prefetch=0,
                grid=(num_m, num_k),
                in_specs=[x_spec, w_spec, vec_spec],
                out_specs=out_spec,
                scratch_shapes=[pltpu.VMEM((TM, C_pad), jnp.float32)]),
            compiler_params=cparams,
        )(patches_p, w_p, bias_p)

    out = out_flat[:M, :Cout].reshape(N, Hout, Wout, Cout)
    return jnp.transpose(out, (0, 3, 1, 2))          # back to NCHW


# --------------------------------------------------------------------------
# Pure-JAX reference (PyTorch training-mode BasicCNNBlock)
# --------------------------------------------------------------------------
def reference(x_nchw, w_oihw, gamma, beta, bias, *, use_bn=True):
    out = jax.lax.conv_general_dilated(
        x_nchw.astype(jnp.float32), w_oihw.astype(jnp.float32),
        window_strides=(1, 1), padding=((1, 1), (1, 1)),
        dimension_numbers=("NCHW", "OIHW", "NCHW"))
    if use_bn:
        mean = out.mean(axis=(0, 2, 3), keepdims=True)
        var = ((out - mean) ** 2).mean(axis=(0, 2, 3), keepdims=True)
        y = (out - mean) / jnp.sqrt(var + 1e-5)
        y = y * gamma.reshape(1, -1, 1, 1) + beta.reshape(1, -1, 1, 1)
        return jnp.where(y > 0, y, 0.1 * y)
    return out + bias.reshape(1, -1, 1, 1)


if __name__ == "__main__":
    key = jax.random.PRNGKey(0)
    k_x, k_w, k_b = jax.random.split(key, 3)

    N, Cin, H, W = 2, 4, 16, 16
    Cout, KH, KW = 16, 3, 3

    x = jax.random.normal(k_x, (N, Cin, H, W), dtype=jnp.float32)
    w = 0.1 * jax.random.normal(k_w, (Cout, Cin, KH, KW), dtype=jnp.float32)
    gamma = jnp.ones((Cout,), jnp.float32)   # BatchNorm2d default affine init
    beta = jnp.zeros((Cout,), jnp.float32)
    bias = 0.1 * jax.random.normal(k_b, (Cout,), dtype=jnp.float32)

    ref_bn = reference(x, w, gamma, beta, bias, use_bn=True)
    ref_nb = reference(x, w, gamma, beta, bias, use_bn=False)

    # f32 compute path, multi-tile M grid (exercises cross-tile BN stats).
    out_bn = jax.block_until_ready(basic_cnn_block(
        x, w, gamma, beta, bias, use_bn=True,
        block_m=128, compute_dtype=jnp.float32))
    assert out_bn.shape == (N, Cout, H, W)
    assert jnp.allclose(out_bn, ref_bn, rtol=1e-4, atol=1e-4)

    out_nb = jax.block_until_ready(basic_cnn_block(
        x, w, gamma, beta, bias, use_bn=False,
        block_m=128, compute_dtype=jnp.float32))
    assert jnp.allclose(out_nb, ref_nb, rtol=1e-4, atol=1e-4)

    # Default bf16 fast path (f32 accumulation) -> looser tolerance.
    out_bn16 = jax.block_until_ready(basic_cnn_block(
        x, w, gamma, beta, bias, use_bn=True))
    assert jnp.allclose(out_bn16, ref_bn, rtol=5e-2, atol=5e-2)

    out_nb16 = jax.block_until_ready(basic_cnn_block(
        x, w, gamma, beta, bias, use_bn=False))
    assert jnp.allclose(out_nb16, ref_nb, rtol=5e-2, atol=5e-2)

    print("KERNEL_OK")
</pallas_src>

<mosaic_0001>
module attributes {stable_mosaic.version = 11 : i64} {
  func.func @conv_stats_kernel(%arg0: i32, %arg1: i32, %arg2: memref<128x48xf32, #tpu.memory_space<vmem>>, %arg3: memref<48x128xf32, #tpu.memory_space<vmem>>, %arg4: memref<128x128xf32, #tpu.memory_space<vmem>>, %arg5: memref<8x128xf32, #tpu.memory_space<vmem>>, %arg6: memref<8x128xf32, #tpu.memory_space<vmem>>, %arg7: memref<128x128xf32, #tpu.memory_space<vmem>>) attributes {dimension_semantics = [#tpu.dimension_semantics<parallel>, #tpu.dimension_semantics<arbitrary>], iteration_bounds = array<i64: 4, 1>, scalar_prefetch = 0 : i64, scratch_operands = 1 : i64, tpu.core_type = #tpu.core_type<tc>, window_params = [{transform_indices = @transform_0, window_bounds = array<i64: 128, 48>}, {transform_indices = @transform_1, window_bounds = array<i64: 48, 128>}, {transform_indices = @transform_2, window_bounds = array<i64: 128, 128>}, {transform_indices = @transform_3, window_bounds = array<i64: 8, 128>}, {transform_indices = @transform_4, window_bounds = array<i64: 8, 128>}]} {
    %c0_i32 = arith.constant 0 : i32
    %0 = arith.cmpi eq, %arg1, %c0_i32 : i32
    %1 = arith.extui %0 : i1 to i32
    %c0_i32_0 = arith.constant 0 : i32
    %2 = arith.cmpi ne, %1, %c0_i32_0 : i32
    scf.if %2 {
      %cst_10 = arith.constant 0.000000e+00 : f32
      %12 = vector.broadcast %cst_10 : f32 to vector<128x128xf32>
      %c0_11 = arith.constant 0 : index
      %c0_12 = arith.constant 0 : index
      %13 = vector.load %arg7[%c0_11, %c0_12] : memref<128x128xf32, #tpu.memory_space<vmem>>, vector<128x128xf32>
      tpu.vector_store %arg7[%c0_11, %c0_12], %12 {strides = array<i32>} : memref<128x128xf32, #tpu.memory_space<vmem>>, vector<128x128xf32>,
    } else {
    }
    %c0 = arith.constant 0 : index
    %c0_1 = arith.constant 0 : index
    %3 = vector.load %arg7[%c0, %c0_1] : memref<128x128xf32, #tpu.memory_space<vmem>>, vector<128x128xf32>
    %c0_2 = arith.constant 0 : index
    %c0_3 = arith.constant 0 : index
    %4 = vector.load %arg2[%c0_2, %c0_3] : memref<128x48xf32, #tpu.memory_space<vmem>>, vector<128x48xf32>
    %c0_4 = arith.constant 0 : index
    %c0_5 = arith.constant 0 : index
    %5 = vector.load %arg3[%c0_4, %c0_5] : memref<48x128xf32, #tpu.memory_space<vmem>>, vector<48x128xf32>
    %cst = arith.constant dense<0.000000e+00> : vector<128x128xf32>
    %6 = tpu.matmul %4, %5, %cst {dimension_numbers = #tpu.dot_dimension_numbers<[1], [0], [0], [1], [0, 0, 1, 1], [], []>} : vector<128x48xf32>, vector<48x128xf32>, vector<128x128xf32> -> vector<128x128xf32>
    %7 = arith.addf %3, %6 : vector<128x128xf32>
    %c0_6 = arith.constant 0 : index
    %c0_7 = arith.constant 0 : index
    %8 = vector.load %arg7[%c0_6, %c0_7] : memref<128x128xf32, #tpu.memory_space<vmem>>, vector<128x128xf32>
    tpu.vector_store %arg7[%c0_6, %c0_7], %7 {strides = array<i32>} : memref<128x128xf32, #tpu.memory_space<vmem>>, vector<128x128xf32>,
    %c0_i32_8 = arith.constant 0 : i32
    %9 = arith.cmpi eq, %arg1, %c0_i32_8 : i32
    %10 = arith.extui %9 : i1 to i32
    %c0_i32_9 = arith.constant 0 : i32
    %11 = arith.cmpi ne, %10, %c0_i32_9 : i32
    scf.if %11 {
      %c0_10 = arith.constant 0 : index
      %c0_11 = arith.constant 0 : index
      %12 = vector.load %arg7[%c0_10, %c0_11] : memref<128x128xf32, #tpu.memory_space<vmem>>, vector<128x128xf32>
      %c0_12 = arith.constant 0 : index
      %c0_13 = arith.constant 0 : index
      %13 = vector.load %arg4[%c0_12, %c0_13] : memref<128x128xf32, #tpu.memory_space<vmem>>, vector<128x128xf32>
      tpu.vector_store %arg4[%c0_12, %c0_13], %12 {strides = array<i32>} : memref<128x128xf32, #tpu.memory_space<vmem>>, vector<128x128xf32>,
      %14 = vector.shape_cast %12 : vector<128x128xf32> to vector<16x8x128xf32>
      %cst_14 = arith.constant dense<0.000000e+00> : vector<8x128xf32>
      %15 = vector.multi_reduction <add>, %14, %cst_14 [0] : vector<16x8x128xf32> to vector<8x128xf32>
      %c0_15 = arith.constant 0 : index
      %c0_16 = arith.constant 0 : index
      %16 = vector.load %arg5[%c0_15, %c0_16] : memref<8x128xf32, #tpu.memory_space<vmem>>, vector<8x128xf32>
      tpu.vector_store %arg5[%c0_15, %c0_16], %15 {strides = array<i32>} : memref<8x128xf32, #tpu.memory_space<vmem>>, vector<8x128xf32>,
      %17 = arith.mulf %14, %14 : vector<16x8x128xf32>
      %cst_17 = arith.constant dense<0.000000e+00> : vector<8x128xf32>
      %18 = vector.multi_reduction <add>, %17, %cst_17 [0] : vector<16x8x128xf32> to vector<8x128xf32>
      %c0_18 = arith.constant 0 : index
      %c0_19 = arith.constant 0 : index
      %19 = vector.load %arg6[%c0_18, %c0_19] : memref<8x128xf32, #tpu.memory_space<vmem>>, vector<8x128xf32>
      tpu.vector_store %arg6[%c0_18, %c0_19], %18 {strides = array<i32>} : memref<8x128xf32, #tpu.memory_space<vmem>>, vector<8x128xf32>,
    } else {
    }
    return
  }
  func.func @transform_0(%arg0: i32, %arg1: i32) -> (i32, i32) {
    %c0_i32 = arith.constant 0 : i32
    return %arg0, %arg1 : i32, i32
  }
  func.func @transform_1(%arg0: i32, %arg1: i32) -> (i32, i32) {
    %c0_i32 = arith.constant 0 : i32
    %c0_i32_0 = arith.constant 0 : i32
    return %arg1, %c0_i32 : i32, i32
  }
  func.func @transform_2(%arg0: i32, %arg1: i32) -> (i32, i32) {
    %c0_i32 = arith.constant 0 : i32
    %c0_i32_0 = arith.constant 0 : i32
    return %arg0, %c0_i32 : i32, i32
  }
  func.func @transform_3(%arg0: i32, %arg1: i32) -> (i32, i32) {
    %c0_i32 = arith.constant 0 : i32
    %c0_i32_0 = arith.constant 0 : i32
    return %arg0, %c0_i32 : i32, i32
  }
  func.func @transform_4(%arg0: i32, %arg1: i32) -> (i32, i32) {
    %c0_i32 = arith.constant 0 : i32
    %c0_i32_0 = arith.constant 0 : i32
    return %arg0, %c0_i32 : i32, i32
  }
}

</mosaic_0001>

<bundles_post_ra>
// kernel: tpu_custom_call.1
= control target key start
LH: loop header
LB: loop body
LE: loop exit
PB: predicated region body
PF: predicated region fallthrough
CT: control target
= control target key end

     0   :  { %10 = vsyncpa [#allocation4], 0  ;;  %s1485_s0 = inlined_call_operand.vmem [shape: f32[512,48], index: 0, kind: input, shape index: {}]   ;;  %s1486_s1 = inlined_call_operand.vmem [shape: f32[48,128], index: 1, kind: input, shape index: {}]   ;;  %s1487_s2 = inlined_call_operand.hbm [shape: f32[512,128], index: 2, kind: output, shape index: {0}]   ;;  %s1488_s3 = inlined_call_operand.hbm [shape: f32[32,128], index: 3, kind: output, shape index: {1}]   ;;  %s1489_s4 = inlined_call_operand.hbm [shape: f32[32,128], index: 4, kind: output, shape index: {2}]  }
   0x1   :  { %12 = vsyncpa [#allocation4 + $0x1], 0 }
   0x2   :  { %13 = vsyncpa [#allocation6], 0 }
   0x3   :  { %15 = vsyncpa [#allocation6 + $0x1], 0  ;;  %s1178_s15 = smov 0   ;;  %s1180_s16 = smov 0  }
   0x4   :  { %s1182_s17 = smov 0   ;;  %s1184_s18 = smov 0  }
   0x5   :  { %s1186_s19 = smov 0   ;;  %s1188_s20 = smov 0  }
   0x6 LB: > { %s828_s21 = sadd.s32 4294967295, %s1146_s20   ;;  %s829_s22 = sadd.s32 4294967294, %s1146_s20   ;;  %s1146_s20 = sphi %s1188_s20, %s21_s20   ;;  %s1142_s19 = sphi %s1186_s19, %s1496_s19   ;;  %s1138_s18 = sphi %s1184_s18, %s1495_s18   ;;  %s1134_s17 = sphi %s1182_s17, %s1494_s17   ;;  %s1130_s16 = sphi %s1180_s16, %s1493_s16   ;;  %s1126_s15 = sphi %s1178_s15, %s1492_s15  }
   0x7   : > { %s33_s23 = sadd.s32 1, %s1142_s19  ;;  %s94_s24 = sadd.s32 1, %s1134_s17 }
   0x8   : > { %p35_p0 = scmp.ge.s32.totalorder %s33_s23, 4  ;;  %p104_p1 = scmp.ne.s32.totalorder %s1134_s17, %s1130_s16 }
   0x9   : > { %p105_p2 = scmp.eq.s32.totalorder %s828_s21, 3  ;;  %p110_p3 = scmp.ne.s32.totalorder %s1130_s16, %s1126_s15 }
   0xa   : > { %s1498_s23 = smov (%p35_p0, %s33_s23), 0  ;;  %p111_p5 = scmp.eq.s32.totalorder %s829_s22, 3 }
   0xb   : > { %p1220_p4 = por %p105_p2, %p104_p1  ;;  %s91_s26 = ssub.s32 %s1142_s19, %s1498_s23 }
   0xc   : > { %p833_p6 = scmp.ge.s32.totalorder %s1146_s20, 1  ;;  %p92_p7 = scmp.eq.s32.totalorder %s91_s26, 0 }
   0xd   : > { %p1229_p8 = por %p111_p5, %p110_p3  ;;  %p202_p9 = scmp.lt.s32.totalorder %s1146_s20, 5 }
   0xe   : > { %s1235_s28 = scalar_select %p92_p7, %s1134_s17, %s94_s24  }
   0xf   : > { %p203_p10 = pnand %p833_p6, %p202_p9 }
  0x10   : > { %v314_v0 = vld [vmem:[%s1486_s1] sm:$0xff] (!%p203_p10)  ;;  %v315_v1 = vld [vmem:[%s1486_s1 + $0x8] sm:$0xff] (!%p203_p10)  ;;  %v316_v2 = vld [vmem:[%s1486_s1 + $0x10] sm:$0xff] (!%p203_p10)  ;;  %s837_s9 = sshll.u32 (!%p203_p10), %s1138_s18, 4  ;;  %vm320_vm0 = vcmask (!%p203_p10), 392192   ;;  %s1294_s6 = sand.u32 (!%p203_p10), 1, %s1130_s16  }
  0x11   : > { %206 = sbr.rel (%p203_p10) target bundleno = 323 (0x143), region = 28  ;;  %v923_v3 = vpack.c.bf16 (!%p203_p10), %v315_v1, %v314_v0  ;;  %v317_v4 = vld [vmem:[%s1486_s1 + $0x18] sm:$0xff] (!%p203_p10)  ;;  %p247_p11 = scmp.lt.s32.totalorder (!%p203_p10), %s837_s9, 63  ;;  %v318_v6 = vld [vmem:[%s1486_s1 + $0x20] sm:$0xff] (!%p203_p10)  ;;  %v319_v7 = vld [vmem:[%s1486_s1 + $0x28] sm:$0xff] (!%p203_p10) }
  0x12   : > { %v927_v5 = vpack.c.bf16 (!%p203_p10), %v317_v4, %v316_v2  ;;  %v931_v8 = vpack.c.bf16 (!%p203_p10), %v319_v7, %v318_v6  ;;  %s834_s7 = sshll.u32 (!%p203_p10), %s1294_s6, 7  ;;  %s630_s14 = scalar_lea.sflag (!%p203_p10), [#allocation4], %s1294_s6 }
  0x13   : > { %924 = vmatprep.subr.bf16.mxu0 (!%p203_p10), %v923_v3  ;;  %935 = vmatprep.subr.bf16.mxu1 (!%p203_p10), %v923_v3  ;;  %s1297_s8 = scalar_lea.vmem (!%p203_p10), [#allocation3], %s834_s7 }
  0x14   : > { %926 = vmatpush3.bf16.msra.mxu0 (!%p203_p10), %v923_v3  ;;  %938 = vmatpush3.bf16.msra.mxu1 (!%p203_p10), %v923_v3  ;;  %s653_s10 = sshll.u32 (!%p203_p10), %s1297_s8, 4  ;;  %s1336_s10 = int_to_ptr.vmem [resolvable:$true] %s653_s10 }
  0x15   : > { %928 = vmatprep.subr.bf16.mxu0 (!%p203_p10), %v927_v5  ;;  %936 = vmatprep.subr.bf16.mxu1 (!%p203_p10), %v927_v5  ;;  %s1008_s24 = scalar_lea.vmem (!%p203_p10), %s1336_s10, 2048 }
  0x16   : > { %p1009_p12 = scmp.ne.s32.totalorder (!%p203_p10), %s1336_s10, %s1008_s24 }
  0x18   : > { %s1500_s9 = smov (!%p247_p11, %s837_s9), 63  ;;  %930 = vmatpush3.bf16.msra.mxu0 %v927_v5  ;;  %939 = vmatpush3.bf16.msra.mxu1 %v927_v5  ;;  %p1010_p13 = pnand %p1009_p12, %p1220_p4 }
  0x19   : > { %s838_s26 = sshll.u32 %s1500_s9, 3  ;;  %932 = vmatprep.subr.bf16.mxu0 %v931_v8  ;;  %937 = vmatprep.subr.bf16.mxu1 %v931_v8  ;;  %s864_s9 = sshll.u32 %s1138_s18, 11 }
  0x1a   : > { %s1259_s5 = scalar_lea.vmem %s1485_s0, %s838_s26  ;;  %s1334_s13 = scalar_lea.hbm %s1487_s2, %s864_s9 }
  0x1b   : > { %v298_v9 = vld [vmem:[%s1259_s5] sm:$0xff]  ;;  %v299_v11 = vld [vmem:[%s1259_s5 + $0x8] sm:$0xff]  ;;  %v300_v12 = vld [vmem:[%s1259_s5 + $0x10] sm:$0xff]  ;;  %p1011_p0 = pneg %p1010_p13  ;;  %s1148_s26 = smov [#allocation3]  }
  0x1c   : > { %899 = vmatprep.mubr.msk.f32.mxu0 %vm320_vm0, %v298_v9  ;;  %v306_v10 = vld [vmem:[%s1259_s5 + $0x40] sm:$0xff]  ;;  %934 = vmatpush3.bf16.msra.mxu0 %v931_v8  ;;  %v307_v13 = vld [vmem:[%s1259_s5 + $0x48] sm:$0xff]  ;;  %v308_v14 = vld [vmem:[%s1259_s5 + $0x50] sm:$0xff]  ;;  %s1012_s29 = sshll.u32 %s1148_s26, 4  ;;  %s1013_s29 = int_to_ptr.vmem [resolvable:$false] %s1012_s29 }
  0x1d   : > { %911 = vmatprep.mubr.msk.f32.mxu1 %vm320_vm0, %v306_v10  ;;  %940 = vmatpush3.bf16.msra.mxu1 %v931_v8  ;;  %v301_v15 = vld [vmem:[%s1259_s5 + $0x18] sm:$0xff]  ;;  %v302_v16 = vld [vmem:[%s1259_s5 + $0x20] sm:$0xff]  ;;  %v303_v19 = vld [vmem:[%s1259_s5 + $0x28] sm:$0xff]  ;;  %s1014_s30 = scalar_lea.vmem %s1013_s29, 4096  ;;  %p1015_p1 = scmp.lt.s32.totalorder %s1336_s10, %s1013_s29 }
  0x1e   : > { %v309_v17 = vld [vmem:[%s1259_s5 + $0x58] sm:$0xff]  ;;  %v310_v18 = vld [vmem:[%s1259_s5 + $0x60] sm:$0xff]  ;;  %v304_v20 = vld [vmem:[%s1259_s5 + $0x30] sm:$0xff]  ;;  %p1016_p2 = scmp.lt.s32.totalorder %s1014_s30, %s1008_s24 }
  0x1f   : > { %900 = vmatmul.mubr.msk.f32.vlgmr.msra.gmra.mrb[0].mxu0 %vm320_vm0, %v299_v11  ;;  %v311_v21 = vld [vmem:[%s1259_s5 + $0x68] sm:$0xff]  ;;  %v312_v22 = vld [vmem:[%s1259_s5 + $0x70] sm:$0xff]  ;;  %v305_v23 = vld [vmem:[%s1259_s5 + $0x38] sm:$0xff] }
  0x20   : > { %902 = vmatprep.mubr.msk.f32.mxu0 %vm320_vm0, %v300_v12  ;;  %912 = vmatmul.mubr.msk.f32.vlgmr.msra.gmra.mrb[0].mxu1 %vm320_vm0, %v307_v13  ;;  %v313_v24 = vld [vmem:[%s1259_s5 + $0x78] sm:$0xff]  ;;  %p1017_p3 = por %p1016_p2, %p1015_p1 }
  0x21   : > { %914 = vmatprep.mubr.msk.f32.mxu1 %vm320_vm0, %v308_v14 }
  0x22   : > { %p1018_p5 = pnand %p1017_p3, %p1011_p0 }
  0x23   : > { %903 = vmatmul.mubr.msk.f32.gmra.mrb[2].mxu0 %vm320_vm0, %v301_v15 }
  0x24   : > { %905 = vmatprep.mubr.msk.f32.mxu0 %vm320_vm0, %v302_v16  ;;  %915 = vmatmul.mubr.msk.f32.gmra.mrb[2].mxu1 %vm320_vm0, %v309_v17 }
  0x25   : > { %917 = vmatprep.mubr.msk.f32.mxu1 %vm320_vm0, %v310_v18 }
  0x27   : > { %906 = vmatmul.mubr.msk.f32.gmra.mrb[4].mxu0 %vm320_vm0, %v303_v19 }
  0x28   : > { %908 = vmatprep.mubr.msk.f32.mxu0 %vm320_vm0, %v304_v20  ;;  %918 = vmatmul.mubr.msk.f32.gmra.mrb[4].mxu1 %vm320_vm0, %v311_v21 }
  0x29   : > { %920 = vmatprep.mubr.msk.f32.mxu1 %vm320_vm0, %v312_v22 }
  0x2b   : > { %909 = vmatmul.mubr.msk.f32.gmra.mrb[6].mxu0 %vm320_vm0, %v305_v23 }
  0x2c   : > { %921 = vmatmul.mubr.msk.f32.gmra.mrb[6].mxu1 %vm320_vm0, %v313_v24 }
  0xf2   : > { %v901_v25 = vpop.f32.mrb[0].mxu0 }
  0xf3   : > { %566 = vst [vmem:[%s1297_s8 + $0x8] sm:$0xff] %v901_v25  ;;  %v598_v26 = vmul.f32 %v901_v25, %v901_v25  ;;  %v435_v27 = vpop.f32.mrb[1].mxu0  ;;  %v1300_v28 = vpop.f32.mrb[0].mxu1 }
  0xf4   : > { %565 = vst [vmem:[%s1297_s8] sm:$0xff] %v435_v27  ;;  %v581_v29 = vadd.f32 %v901_v25, %v435_v27  ;;  %v597_v30 = vmul.f32 %v435_v27, %v435_v27  ;;  %574 = vst [vmem:[%s1297_s8 + $0x48] sm:$0xff] %v1300_v28  ;;  %v1305_v31 = vpop.f32.mrb[1].mxu1 }
  0xf5   : > { %573 = vst [vmem:[%s1297_s8 + $0x40] sm:$0xff] %v1305_v31  ;;  %v605_v62 = vmul.f32 %v1305_v31, %v1305_v31 }
  0xf6   : > { %v613_v32 = vadd.f32 %v598_v26, %v597_v30  ;;  %v904_v33 = vpop.f32.mrb[2].mxu0 }
  0xf7   : > { %568 = vst [vmem:[%s1297_s8 + $0x18] sm:$0xff] %v904_v33  ;;  %v445_v34 = vpop.f32.mrb[3].mxu0  ;;  %v1310_v35 = vpop.f32.mrb[2].mxu1  ;;  %v600_v39 = vmul.f32 %v904_v33, %v904_v33 }
  0xf8   : > { %567 = vst [vmem:[%s1297_s8 + $0x10] sm:$0xff] %v445_v34  ;;  %v582_v36 = vadd.f32 %v581_v29, %v445_v34  ;;  %v599_v37 = vmul.f32 %v445_v34, %v445_v34  ;;  %576 = vst [vmem:[%s1297_s8 + $0x58] sm:$0xff] %v1310_v35  ;;  %v1315_v38 = vpop.f32.mrb[3].mxu1 }
  0xf9   : > { %575 = vst [vmem:[%s1297_s8 + $0x50] sm:$0xff] %v1315_v38 }
  0xfa   : > { %v614_v40 = vadd.f32 %v613_v32, %v599_v37  ;;  %v907_v41 = vpop.f32.mrb[4].mxu0  ;;  %v583_v42 = vadd.f32 %v904_v33, %v582_v36 }
  0xfb   : > { %570 = vst [vmem:[%s1297_s8 + $0x28] sm:$0xff] %v907_v41  ;;  %v455_v43 = vpop.f32.mrb[5].mxu0  ;;  %v1320_v44 = vpop.f32.mrb[4].mxu1  ;;  %v602_v49 = vmul.f32 %v907_v41, %v907_v41 }
  0xfc   : > { %569 = vst [vmem:[%s1297_s8 + $0x20] sm:$0xff] %v455_v43  ;;  %v584_v45 = vadd.f32 %v583_v42, %v455_v43  ;;  %v601_v46 = vmul.f32 %v455_v43, %v455_v43  ;;  %v615_v47 = vadd.f32 %v614_v40, %v600_v39  ;;  %578 = vst [vmem:[%s1297_s8 + $0x68] sm:$0xff] %v1320_v44  ;;  %v1327_v48 = vpop.f32.mrb[5].mxu1 }
  0xfd   : > { %577 = vst [vmem:[%s1297_s8 + $0x60] sm:$0xff] %v1327_v48 }
  0xfe   : > { %v616_v50 = vadd.f32 %v615_v47, %v601_v46  ;;  %v910_v51 = vpop.f32.mrb[6].mxu0  ;;  %v585_v52 = vadd.f32 %v907_v41, %v584_v45 }
  0xff   : > { %572 = vst [vmem:[%s1297_s8 + $0x38] sm:$0xff] %v910_v51  ;;  %v465_v53 = vpop.f32.mrb[7].mxu0  ;;  %v1339_v54 = vpop.f32.mrb[6].mxu1  ;;  %v604_v59 = vmul.f32 %v910_v51, %v910_v51 }
 0x100   : > { %571 = vst [vmem:[%s1297_s8 + $0x30] sm:$0xff] %v465_v53  ;;  %v586_v55 = vadd.f32 %v585_v52, %v465_v53  ;;  %v603_v56 = vmul.f32 %v465_v53, %v465_v53  ;;  %v617_v57 = vadd.f32 %v616_v50, %v602_v49  ;;  %580 = vst [vmem:[%s1297_s8 + $0x78] sm:$0xff] %v1339_v54  ;;  %v505_v58 = vpop.f32.mrb[7].mxu1 }
 0x101   : > { %579 = vst [vmem:[%s1297_s8 + $0x70] sm:$0xff] %v505_v58 }
 0x102   : > { %v587_v60 = vadd.f32 %v910_v51, %v586_v55  ;;  %v618_v61 = vadd.f32 %v617_v57, %v603_v56 }
 0x103   : > { %1021 = shalt.err (!%p1018_p5)
}
 0x104   : > { %s1022_s5 = scalar_lea.hbm %s1334_s13, 2048  ;;  %s1026_s9 = scalar_lea.hbm %s1487_s2, 8192 }
 0x105   : > { %p1023_p6 = scmp.ne.s32.totalorder %s1334_s13, %s1022_s5  ;;  %p1027_p10 = scmp.lt.u32.totalorder %s1334_s13, %s1487_s2 }
 0x106   : > { %p1028_p11 = scmp.lt.u32.totalorder %s1026_s9, %s1022_s5  ;;  %p1030_p13 = scmp.lt.u32.totalorder %s1022_s5, %s1334_s13 }
 0x107   : > { %p1024_p7 = pnand %p1023_p6, %p1220_p4 }
 0x108   : > { %p1029_p12 = por %p1028_p11, %p1027_p10 }
 0x109   : > { %p1025_p9 = pneg %p1024_p7 }
 0x10a   : > { %p1031_p0 = por %p1030_p13, %p1029_p12 }
 0x10c   : > { %p1032_p1 = pnand %p1031_p0, %p1025_p9 }
 0x10e   : > { %1035 = shalt.err (!%p1032_p1)
}
 0x10f   : > { %s1149_s24 = smov 128   ;;  %s1150_s26 = smov 8   ;;  %v619_v63 = vadd.f32 %v618_v61, %v604_v59  ;;  %v588_v0 = vadd.f32 %v587_v60, %v1305_v31  ;;  %v606_v1 = vmul.f32 %v1300_v28, %v1300_v28  ;;  %v607_v4 = vmul.f32 %v1315_v38, %v1315_v38 }
 0x110   : > { %941 = dma.vmem_to_hbm [thread:$0]  (%p1220_p4), %s1336_s10, 2048, %s1334_s13, %s630_s14, %s1149_s24, %s1149_s24, %s1150_s26   ;;  %v608_v7 = vmul.f32 %v1310_v35, %v1310_v35  ;;  %v609_v10 = vmul.f32 %v1327_v48, %v1327_v48  ;;  %v610_v13 = vmul.f32 %v1320_v44, %v1320_v44  ;;  %v611_v16 = vmul.f32 %v505_v58, %v505_v58 }
 0x111   : > { %v620_v2 = vadd.f32 %v619_v63, %v605_v62  ;;  %v589_v3 = vadd.f32 %v1300_v28, %v588_v0  ;;  %s835_s29 = sshll.u32 %s1294_s6, 3  ;;  %s1390_s6 = sand.u32 1, %s828_s21   ;;  %v612_v19 = vmul.f32 %v1339_v54, %v1339_v54 }
 0x112   : > { %s860_s10 = sshll.u32 %s1138_s18, 7  ;;  %s238_s13 = scalar_lea.vmem [#allocation5], %s835_s29 }
 0x113   : > { %v590_v5 = vadd.f32 %v589_v3, %v1315_v38  ;;  %v621_v6 = vadd.f32 %v620_v2, %v606_v1  ;;  %s669_s14 = sshll.u32 %s238_s13, 4  ;;  %s1393_s30 = scalar_lea.vmem [#allocation7], %s835_s29  ;;  %s1404_s14 = int_to_ptr.vmem [resolvable:$true] %s669_s14 }
 0x114   : > { %s682_s5 = sshll.u32 %s1393_s30, 4  ;;  %s1402_s18 = scalar_lea.hbm %s1488_s3, %s860_s10  ;;  %s1411_s5 = int_to_ptr.vmem [resolvable:$true] %s682_s5 }
 0x115   : > { %v622_v8 = vadd.f32 %v621_v6, %v607_v4  ;;  %v591_v9 = vadd.f32 %v1310_v35, %v590_v5  ;;  %s1409_s11 = scalar_lea.hbm %s1489_s4, %s860_s10  ;;  %s635_s12 = scalar_lea.sflag [#allocation6], %s1390_s6 }
 0x116   : > { %s1036_s24 = scalar_lea.vmem %s1404_s14, 128  ;;  %s1151_s26 = smov [#allocation5]  }
 0x117   : > { %v592_v11 = vadd.f32 %v591_v9, %v1327_v48  ;;  %v623_v12 = vadd.f32 %v622_v8, %v608_v7  ;;  %p1037_p2 = scmp.ne.s32.totalorder %s1404_s14, %s1036_s24  ;;  %s1040_s29 = sshll.u32 %s1151_s26, 4  ;;  %s1041_s29 = int_to_ptr.vmem [resolvable:$false] %s1040_s29 }
 0x118   : > { %s1042_s7 = scalar_lea.vmem %s1041_s29, 256  ;;  %p1043_p6 = scmp.lt.s32.totalorder %s1404_s14, %s1041_s29 }
 0x119   : > { %v624_v14 = vadd.f32 %v623_v12, %v609_v10  ;;  %v593_v15 = vadd.f32 %v1320_v44, %v592_v11  ;;  %p1038_p3 = pnand %p1037_p2, %p1220_p4  ;;  %p1044_p7 = scmp.lt.s32.totalorder %s1042_s7, %s1036_s24 }
 0x11b   : > { %v594_v17 = vadd.f32 %v593_v15, %v505_v58  ;;  %v625_v18 = vadd.f32 %v624_v14, %v610_v13  ;;  %p1039_p5 = pneg %p1038_p3  ;;  %p1045_p9 = por %p1044_p7, %p1043_p6 }
 0x11d   : > { %v595_v20 = vadd.f32 %v1339_v54, %v594_v17  ;;  %v626_v21 = vadd.f32 %v625_v18, %v611_v16  ;;  %p1046_p10 = pnand %p1045_p9, %p1039_p5 }
 0x11f   : > { %v627_v22 = vadd.f32 %v626_v21, %v612_v19  ;;  %596 = vst [vmem:[%s238_s13] sm:$0xff] %v595_v20 }
 0x120   : > { %1049 = shalt.err (!%p1046_p10)
}
 0x121   : > { %s1050_s10 = scalar_lea.hbm %s1402_s18, 128  ;;  %s1054_s8 = scalar_lea.hbm %s1488_s3, 512 }
 0x122   : > { %p1051_p11 = scmp.ne.s32.totalorder %s1402_s18, %s1050_s10  ;;  %p1055_p0 = scmp.lt.u32.totalorder %s1402_s18, %s1488_s3 }
 0x123   : > { %p1056_p1 = scmp.lt.u32.totalorder %s1054_s8, %s1050_s10  ;;  %p1058_p3 = scmp.lt.u32.totalorder %s1050_s10, %s1402_s18 }
 0x124   : > { %p1052_p12 = pnand %p1051_p11, %p1220_p4 }
 0x125   : > { %p1057_p2 = por %p1056_p1, %p1055_p0 }
 0x126   : > { %p1053_p13 = pneg %p1052_p12 }
 0x127   : > { %p1059_p5 = por %p1058_p3, %p1057_p2 }
 0x129   : > { %p1060_p6 = pnand %p1059_p5, %p1053_p13 }
 0x12b   : > { %1063 = shalt.err (!%p1060_p6)
}
 0x12c   : > { %942 = dma.vmem_to_hbm [thread:$0]  (%p1220_p4), %s1404_s14, 128, %s1402_s18, %s635_s12   ;;  %628 = vst [vmem:[%s1393_s30] sm:$0xff] %v627_v22 }
 0x12d   : > { %s1064_s24 = scalar_lea.vmem %s1411_s5, 128  ;;  %s1152_s29 = smov [#allocation7]  }
 0x12e   : > { %p1065_p7 = scmp.ne.s32.totalorder %s1411_s5, %s1064_s24  ;;  %s1068_s7 = sshll.u32 %s1152_s29, 4  ;;  %s1069_s7 = int_to_ptr.vmem [resolvable:$false] %s1068_s7 }
 0x12f   : > { %s1070_s10 = scalar_lea.vmem %s1069_s7, 256  ;;  %p1071_p11 = scmp.lt.s32.totalorder %s1411_s5, %s1069_s7 }
 0x130   : > { %p1066_p9 = pnand %p1065_p7, %p1220_p4  ;;  %p1072_p12 = scmp.lt.s32.totalorder %s1070_s10, %s1064_s24 }
 0x132   : > { %p1067_p10 = pneg %p1066_p9  ;;  %p1073_p13 = por %p1072_p12, %p1071_p11 }
 0x134   : > { %p1074_p0 = pnand %p1073_p13, %p1067_p10 }
 0x136   : > { %1077 = shalt.err (!%p1074_p0)
}
 0x137   : > { %s1078_s14 = scalar_lea.hbm %s1409_s11, 128  ;;  %s1082_s13 = scalar_lea.hbm %s1489_s4, 512 }
 0x138   : > { %p1079_p1 = scmp.ne.s32.totalorder %s1409_s11, %s1078_s14  ;;  %p1083_p5 = scmp.lt.u32.totalorder %s1409_s11, %s1489_s4 }
 0x139   : > { %p1084_p6 = scmp.lt.u32.totalorder %s1082_s13, %s1078_s14  ;;  %p1086_p9 = scmp.lt.u32.totalorder %s1078_s14, %s1409_s11 }
 0x13a   : > { %p1080_p2 = pnand %p1079_p1, %p1220_p4 }
 0x13b   : > { %p1085_p7 = por %p1084_p6, %p1083_p5 }
 0x13c   : > { %p1081_p3 = pneg %p1080_p2 }
 0x13d   : > { %p1087_p10 = por %p1086_p9, %p1085_p7 }
 0x13f   : > { %p1088_p11 = pnand %p1087_p10, %p1081_p3 }
 0x141   : > { %1091 = shalt.err (!%p1088_p11)
}
 0x142   : > { %943 = dma.vmem_to_hbm [thread:$0]  (%p1220_p4), %s1411_s5, 128, %s1409_s11, %s635_s12  }
 0x143 PF: > { %p957_p12 = scmp.ge.s32.totalorder %s1146_s20, 2  ;;  %s694_s9 = sand.u32 1, %s1126_s15  }
 0x144   : > { %s695_s26 = scalar_lea.sflag [#allocation4], %s694_s9 }
 0x145   : > { %p948_p13 = pnand %p957_p12, %p1229_p8 }
 0x147   : > { %1117 = dma.done.wait (!%p948_p13), %s695_s26, 2048  }
 0x148   : > { %1119 = vsyncadd (!%p948_p13), %s695_s26, 4294965248  ;;  %s703_s24 = sand.u32 1, %s829_s22  }
 0x149   : > { %s704_s25 = scalar_lea.sflag [#allocation6], %s703_s24 }
 0x14a   : > { %1121 = dma.done.wait (!%p948_p13), %s704_s25, 256  }
 0x14b   : > { %1123 = vsyncadd (!%p948_p13), %s704_s25, 4294967040  ;;  %s21_s20 = sadd.s32 1, %s1146_s20   ;;  %s1492_s15 = smov %s1130_s16 }
 0x14c   : > { %p18_p4 = scmp.ge.s32.totalorder %s21_s20, 6   ;;  %s1493_s16 = smov %s1134_s17 }
 0x14d   : > { %s1494_s17 = smov %s1235_s28  ;;  %s1495_s18 = smov %s1142_s19 }
 0x14e   : > { %s1496_s19 = smov %s1498_s23  ;;  %20 = sbr.rel (!%p18_p4) target bundleno = 6 (0x6), region = 106 }
 0x155   :  { %718 = vsyncpa [#allocation4], 1 }
 0x156   :  { %720 = vsyncpa [#allocation4 + $0x1], 1 }
 0x157   :  { %721 = vsyncpa [#allocation6], 1 }
 0x158   :  { %723 = vsyncpa [#allocation6 + $0x1], 1 }

</bundles_post_ra>
